<compile_context>
chip_gen: v5e
topology: v5e:2x2
jax: 0.10.0
libtpu: 0.0.40
codegen_flags: <defaults>
</compile_context>

<pallas_src>
import functools

import jax
import jax.numpy as jnp
from jax.experimental import pallas as pl
from jax.experimental.pallas import tpu as pltpu


# ---------------------------------------------------------------------------
# Kernels
# ---------------------------------------------------------------------------

def _ffn_kernel_single(x_ref, w1_ref, b1_ref, w2_ref, b2_ref, o_ref):
    """d_ffn fits in a single chunk: no accumulator scratch, one store per token tile."""
    h = jnp.dot(x_ref[...], w1_ref[...], preferred_element_type=jnp.float32)
    h = jnp.maximum(h + b1_ref[...].astype(jnp.float32), 0.0)
    # TODO(synk): training-mode stochastic dropout (pltpu.prng_*) not implemented; eval-mode identity.
    out = jnp.dot(h.astype(w2_ref.dtype), w2_ref[...], preferred_element_type=jnp.float32)
    o_ref[...] = (out + b2_ref[...].astype(jnp.float32)).astype(o_ref.dtype)


def _ffn_kernel_chunked(x_ref, w1_ref, b1_ref, w2_ref, b2_ref, o_ref, acc_ref):
    """d_ffn chunked reduction over the innermost grid axis, f32 VMEM accumulator."""
    k = pl.program_id(1)
    nk = pl.num_programs(1)

    # linear1 chunk + bias + ReLU. Operands stay in native dtype (bf16 feeds the MXU
    # directly); accumulation / bias / ReLU happen in f32.
    h = jnp.dot(x_ref[...], w1_ref[...], preferred_element_type=jnp.float32)
    h = jnp.maximum(h + b1_ref[...].astype(jnp.float32), 0.0)
    # TODO(synk): training-mode stochastic dropout not implemented; eval-mode identity.

    # linear2 chunk: cast hidden back to the weight dtype for the MXU, accumulate in f32.
    contrib = jnp.dot(h.astype(w2_ref.dtype), w2_ref[...],
                      preferred_element_type=jnp.float32)

    @pl.when(k == 0)
    def _():
        # Fold bias2 into the accumulator init: no separate zero pass; finalize is a cast.
        acc_ref[...] = contrib + b2_ref[...].astype(jnp.float32)

    @pl.when(k > 0)
    def _():
        acc_ref[...] += contrib

    @pl.when(k == nk - 1)
    def _():
        o_ref[...] = acc_ref[...].astype(o_ref.dtype)


# ---------------------------------------------------------------------------
# Tiling / config helpers
# ---------------------------------------------------------------------------

def _round_up(x, m):
    return ((x + m - 1) // m) * m


def _pad_axis(a, target, axis):
    pad = target - a.shape[axis]
    if pad <= 0:
        return a
    widths = [(0, 0)] * a.ndim
    widths[axis] = (0, pad)
    return jnp.pad(a, widths)


def _chip_config():
    kind = ""
    try:
        kind = jax.devices()[0].device_kind.lower()
    except Exception:
        pass
    if "v7" in kind:
        # 64 MiB/TC total: leave headroom for compiler scratch; 2 TCs -> want n_i >= 2.
        return dict(tm=512, tffn=1024, vmem=52 * 1024 * 1024, align=256, two_tiles=True)
    if "v6" in kind:
        # ~650 FLOP/B compute/memory crossover: tm=1024 gives margin; 128 MiB physical VMEM.
        return dict(tm=1024, tffn=1024, vmem=100 * 1024 * 1024, align=256, two_tiles=False)
    if "v5" in kind:
        # ~240 FLOP/B crossover; 4x128x128 MXU so 128-alignment suffices.
        return dict(tm=512, tffn=2048, vmem=96 * 1024 * 1024, align=128, two_tiles=False)
    return dict(tm=512, tffn=1024, vmem=64 * 1024 * 1024, align=256, two_tiles=False)


def _vmem_estimate(tm, tffn, d_model, itemsize):
    x_out = 2 * 2 * tm * d_model * itemsize        # x + out tiles, double-buffered
    w = 2 * 2 * d_model * tffn * itemsize          # w1 + w2 chunks, double-buffered
    acc = tm * d_model * 4                         # f32 accumulator scratch
    bias = 2 * 2 * (tffn + d_model) * itemsize     # bias chunks, double-buffered
    return x_out + w + acc + bias


def _pick_tffn(d_ffn, target, align):
    """Chunk size for the d_ffn reduction. Prefer divisors of d_ffn (no wrapper-side weight
    padding / HBM copies); fall back to padded chunks only if no aligned divisor exists."""
    if d_ffn <= target:
        return d_ffn, d_ffn
    best = 0
    for cand in range(align, target + 1, align):        # MXU-width-aligned divisors
        if d_ffn % cand == 0:
            best = cand
    if best == 0:
        for cand in range(128, target + 1, 128):         # lane-aligned divisors
            if d_ffn % cand == 0:
                best = cand
    if best:
        return best, d_ffn
    t = _round_up(min(target, d_ffn), align)              # last resort: pad d_ffn
    return t, _round_up(d_ffn, t)


# ---------------------------------------------------------------------------
# pallas_call wrapper
# ---------------------------------------------------------------------------

@functools.partial(jax.jit,
                   static_argnames=("tm", "tffn", "M_pad", "ffn_pad", "vmem_limit"))
def _ffn_impl(x, w1, b1, w2, b2, *, tm, tffn, M_pad, ffn_pad, vmem_limit):
    B, S, d_model = x.shape
    d_ffn = w1.shape[1]
    M = B * S

    x2d = _pad_axis(x.reshape(M, d_model), M_pad, 0)
    w1p = _pad_axis(w1, ffn_pad, 1)
    b1p = _pad_axis(b1.reshape(1, d_ffn), ffn_pad, 1)
    w2p = _pad_axis(w2, ffn_pad, 0)
    b2_2d = b2.reshape(1, d_model)

    n_i = M_pad // tm
    n_k = ffn_pad // tffn

    itemsize = jnp.dtype(x.dtype).itemsize
    cost = pl.CostEstimate(
        flops=4 * M_pad * d_model * ffn_pad,
        transcendentals=0,
        bytes_accessed=(n_i * 2 * d_model * ffn_pad * itemsize   # weights re-streamed per token tile
                        + 2 * M_pad * d_model * itemsize),        # x in + out
    )

    if n_k == 1:
        grid_spec = pltpu.PrefetchScalarGridSpec(
            num_scalar_prefetch=0,
            grid=(n_i,),
            in_specs=[
                pl.BlockSpec((tm, d_model), lambda i: (i, 0)),        # x tile
                pl.BlockSpec((d_model, tffn), lambda i: (0, 0)),      # w1 (whole)
                pl.BlockSpec((1, tffn), lambda i: (0, 0)),            # b1
                pl.BlockSpec((tffn, d_model), lambda i: (0, 0)),      # w2 (whole)
                pl.BlockSpec((1, d_model), lambda i: (0, 0)),         # b2
            ],
            out_specs=pl.BlockSpec((tm, d_model), lambda i: (i, 0)),
        )
        kernel = _ffn_kernel_single
        dims = ("parallel",)
    else:
        grid_spec = pltpu.PrefetchScalarGridSpec(
            num_scalar_prefetch=0,
            grid=(n_i, n_k),                                           # reduction axis last
            in_specs=[
                pl.BlockSpec((tm, d_model), lambda i, k: (i, 0)),       # x tile (reused over k)
                pl.BlockSpec((d_model, tffn), lambda i, k: (0, k)),     # w1 chunk
                pl.BlockSpec((1, tffn), lambda i, k: (0, k)),           # b1 chunk
                pl.BlockSpec((tffn, d_model), lambda i, k: (k, 0)),     # w2 chunk
                pl.BlockSpec((1, d_model), lambda i, k: (0, 0)),        # b2
            ],
            out_specs=pl.BlockSpec((tm, d_model), lambda i, k: (i, 0)),
            scratch_shapes=[pltpu.VMEM((tm, d_model), jnp.float32)],
        )
        kernel = _ffn_kernel_chunked
        dims = ("parallel", "arbitrary")

    out2d = pl.pallas_call(
        kernel,
        out_shape=jax.ShapeDtypeStruct((M_pad, d_model), x.dtype),
        grid_spec=grid_spec,
        compiler_params=pltpu.CompilerParams(
            dimension_semantics=dims,
            vmem_limit_bytes=vmem_limit),
        cost_estimate=cost,
    )(x2d, w1p, b1p, w2p, b2_2d)

    return out2d[:M].reshape(B, S, d_model)


def feed_forward(x, w1, b1, w2, b2, *, tm=None, tffn=None, vmem_limit_bytes=None):
    """x: [B, S, d_model] -> [B, S, d_model].

    Tile selection is generation-aware (v5e / v6e / v7x) unless tm / tffn / vmem_limit_bytes
    are given explicitly. Weights are [in_features, out_features].
    """
    B, S, d_model = x.shape
    d_ffn = w1.shape[1]
    M = B * S

    cfg = _chip_config()
    tm_t = cfg["tm"] if tm is None else tm
    tffn_t = cfg["tffn"] if tffn is None else tffn
    vmem_limit = cfg["vmem"] if vmem_limit_bytes is None else vmem_limit_bytes
    align = cfg["align"]

    itemsize = jnp.dtype(x.dtype).itemsize
    sub = {1: 32, 2: 16}.get(itemsize, 8)              # dtype-aware sublane multiple

    # Fit double-buffered tiles under the VMEM budget: shrink tffn before tm (total weight
    # HBM traffic scales with 1/tm; tffn only sets DMA granularity / step count).
    budget = int(vmem_limit * 0.8)
    while _vmem_estimate(tm_t, tffn_t, d_model, itemsize) > budget and tffn_t > align:
        tffn_t = max(align, tffn_t // 2)
    while _vmem_estimate(tm_t, tffn_t, d_model, itemsize) > budget and tm_t > sub:
        tm_t = max(sub, tm_t // 2)

    # Token tile: clamp to the (sublane-rounded) token count; on 2-TC chips guarantee
    # n_i >= 2 so the "parallel" token axis actually shards across both TensorCores.
    tm_eff = min(tm_t, _round_up(M, sub))
    if cfg["two_tiles"] and M >= 2 * sub:
        tm_eff = min(tm_eff, _round_up((M + 1) // 2, sub))
    M_pad = _round_up(M, tm_eff)

    tffn_eff, ffn_pad = _pick_tffn(d_ffn, tffn_t, align)

    return _ffn_impl(x, w1, b1, w2, b2, tm=tm_eff, tffn=tffn_eff,
                     M_pad=M_pad, ffn_pad=ffn_pad, vmem_limit=vmem_limit)


# ---------------------------------------------------------------------------
# Init / reference / tests
# ---------------------------------------------------------------------------

def init_params(key, d_model, d_ffn, dtype=jnp.float32):
    """Deterministic init matching nn.Linear's U(-1/sqrt(fan_in), 1/sqrt(fan_in))."""
    k1, k2, k3, k4 = jax.random.split(key, 4)
    lim1 = 1.0 / jnp.sqrt(d_model)
    lim2 = 1.0 / jnp.sqrt(d_ffn)
    w1 = jax.random.uniform(k1, (d_model, d_ffn), dtype, -lim1, lim1)
    b1 = jax.random.uniform(k2, (d_ffn,), dtype, -lim1, lim1)
    w2 = jax.random.uniform(k3, (d_ffn, d_model), dtype, -lim2, lim2)
    b2 = jax.random.uniform(k4, (d_model,), dtype, -lim2, lim2)
    return w1, b1, w2, b2


def _reference(x, w1, b1, w2, b2):
    return jnp.maximum(x.astype(jnp.float32) @ w1.astype(jnp.float32) + b1.astype(jnp.float32),
                       0.0) @ w2.astype(jnp.float32) + b2.astype(jnp.float32)


if __name__ == "__main__":
    key = jax.random.PRNGKey(0)
    kx, kp, kx2, kp2, kp3 = jax.random.split(key, 5)

    # ---- Test 1: small f32, single d_ffn chunk (no-scratch kernel) ----
    B, S, d_model, d_ffn = 2, 8, 32, 64
    x = jax.random.normal(kx, (B, S, d_model), jnp.float32)
    w1, b1, w2, b2 = init_params(kp, d_model, d_ffn)
    out = jax.block_until_ready(feed_forward(x, w1, b1, w2, b2))
    ref = _reference(x, w1, b1, w2, b2)
    assert out.shape == (B, S, d_model)
    assert jnp.allclose(out, ref, atol=1e-4, rtol=1e-4)

    # ---- Test 2: token count not a multiple of the tile (exercises M padding) ----
    x_odd = jax.random.normal(kx2, (1, 5, d_model), jnp.float32)
    out_odd = jax.block_until_ready(feed_forward(x_odd, w1, b1, w2, b2))
    ref_odd = _reference(x_odd, w1, b1, w2, b2)
    assert out_odd.shape == (1, 5, d_model)
    assert jnp.allclose(out_odd, ref_odd, atol=1e-4, rtol=1e-4)

    # ---- Test 3: chunked d_ffn reduction, divisor chunk (accumulator init/finalize fold) ----
    d_model3, d_ffn3 = 128, 256
    x3 = jax.random.normal(kx, (2, 8, d_model3), jnp.float32)
    w1c, b1c, w2c, b2c = init_params(kp2, d_model3, d_ffn3)
    out3 = jax.block_until_ready(feed_forward(x3, w1c, b1c, w2c, b2c, tffn=128))
    ref3 = _reference(x3, w1c, b1c, w2c, b2c)
    assert jnp.allclose(out3, ref3, atol=1e-4, rtol=1e-4)

    # ---- Test 4: native bf16 MXU path (loose tolerance vs f32 reference) ----
    xb = x.astype(jnp.bfloat16)
    w1b, b1b, w2b, b2b = (a.astype(jnp.bfloat16) for a in (w1, b1, w2, b2))
    outb = jax.block_until_ready(feed_forward(xb, w1b, b1b, w2b, b2b))
    refb = _reference(x, w1, b1, w2, b2)
    assert outb.dtype == jnp.bfloat16
    assert jnp.allclose(outb.astype(jnp.float32), refb, atol=1e-1, rtol=1e-1)

    # ---- Test 5: d_ffn with no aligned divisor (exercises padded-chunk fallback) ----
    d_model5, d_ffn5 = 128, 320
    x5 = jax.random.normal(kx2, (2, 8, d_model5), jnp.float32)
    w1e, b1e, w2e, b2e = init_params(kp3, d_model5, d_ffn5)
    out5 = jax.block_until_ready(feed_forward(x5, w1e, b1e, w2e, b2e, tffn=128))
    ref5 = _reference(x5, w1e, b1e, w2e, b2e)
    assert jnp.allclose(out5, ref5, atol=1e-4, rtol=1e-4)

    print("KERNEL_OK")
</pallas_src>

<mosaic_0001>
module attributes {stable_mosaic.version = 11 : i64} {
  func.func @_ffn_kernel_single(%arg0: i32, %arg1: memref<16x32xf32, #tpu.memory_space<vmem>>, %arg2: memref<32x64xf32, #tpu.memory_space<vmem>>, %arg3: memref<1x64xf32, #tpu.memory_space<vmem>>, %arg4: memref<64x32xf32, #tpu.memory_space<vmem>>, %arg5: memref<1x32xf32, #tpu.memory_space<vmem>>, %arg6: memref<16x32xf32, #tpu.memory_space<vmem>>) attributes {dimension_semantics = [#tpu.dimension_semantics<parallel>], iteration_bounds = array<i64: 1>, scalar_prefetch = 0 : i64, scratch_operands = 0 : i64, tpu.core_type = #tpu.core_type<tc>, window_params = [{transform_indices = @transform_0, window_bounds = array<i64: 16, 32>}, {pipeline_mode = #tpu.pipeline_mode<synchronous>, transform_indices = @transform_1, window_bounds = array<i64: 32, 64>}, {pipeline_mode = #tpu.pipeline_mode<synchronous>, transform_indices = @transform_2, window_bounds = array<i64: 1, 64>}, {pipeline_mode = #tpu.pipeline_mode<synchronous>, transform_indices = @transform_3, window_bounds = array<i64: 64, 32>}, {pipeline_mode = #tpu.pipeline_mode<synchronous>, transform_indices = @transform_4, window_bounds = array<i64: 1, 32>}, {transform_indices = @transform_5, window_bounds = array<i64: 16, 32>}]} {
    %c0 = arith.constant 0 : index
    %c0_0 = arith.constant 0 : index
    %0 = vector.load %arg1[%c0, %c0_0] : memref<16x32xf32, #tpu.memory_space<vmem>>, vector<16x32xf32>
    %c0_1 = arith.constant 0 : index
    %c0_2 = arith.constant 0 : index
    %1 = vector.load %arg2[%c0_1, %c0_2] : memref<32x64xf32, #tpu.memory_space<vmem>>, vector<32x64xf32>
    %cst = arith.constant dense<0.000000e+00> : vector<16x64xf32>
    %2 = tpu.matmul %0, %1, %cst {dimension_numbers = #tpu.dot_dimension_numbers<[1], [0], [0], [1], [0, 0, 1, 1], [], []>} : vector<16x32xf32>, vector<32x64xf32>, vector<16x64xf32> -> vector<16x64xf32>
    %c0_3 = arith.constant 0 : index
    %c0_4 = arith.constant 0 : index
    %3 = vector.load %arg3[%c0_3, %c0_4] : memref<1x64xf32, #tpu.memory_space<vmem>>, vector<1x64xf32>
    %4 = vector.broadcast %3 : vector<1x64xf32> to vector<16x64xf32>
    %5 = arith.addf %2, %4 : vector<16x64xf32>
    %cst_5 = arith.constant 0.000000e+00 : f32
    %6 = vector.broadcast %cst_5 : f32 to vector<16x64xf32>
    %7 = arith.maximumf %5, %6 : vector<16x64xf32>
    %c0_6 = arith.constant 0 : index
    %c0_7 = arith.constant 0 : index
    %8 = vector.load %arg4[%c0_6, %c0_7] : memref<64x32xf32, #tpu.memory_space<vmem>>, vector<64x32xf32>
    %cst_8 = arith.constant dense<0.000000e+00> : vector<16x32xf32>
    %9 = tpu.matmul %7, %8, %cst_8 {dimension_numbers = #tpu.dot_dimension_numbers<[1], [0], [0], [1], [0, 0, 1, 1], [], []>} : vector<16x64xf32>, vector<64x32xf32>, vector<16x32xf32> -> vector<16x32xf32>
    %c0_9 = arith.constant 0 : index
    %c0_10 = arith.constant 0 : index
    %10 = vector.load %arg5[%c0_9, %c0_10] : memref<1x32xf32, #tpu.memory_space<vmem>>, vector<1x32xf32>
    %11 = vector.broadcast %10 : vector<1x32xf32> to vector<16x32xf32>
    %12 = arith.addf %9, %11 : vector<16x32xf32>
    %c0_11 = arith.constant 0 : index
    %c0_12 = arith.constant 0 : index
    %13 = vector.load %arg6[%c0_11, %c0_12] : memref<16x32xf32, #tpu.memory_space<vmem>>, vector<16x32xf32>
    tpu.vector_store %arg6[%c0_11, %c0_12], %12 {strides = array<i32>} : memref<16x32xf32, #tpu.memory_space<vmem>>, vector<16x32xf32>,
    return
  }
  func.func @transform_0(%arg0: i32) -> (i32, i32) {
    %c0_i32 = arith.constant 0 : i32
    %c0_i32_0 = arith.constant 0 : i32
    return %arg0, %c0_i32 : i32, i32
  }
  func.func @transform_1(%arg0: i32) -> (i32, i32) {
    %c0_i32 = arith.constant 0 : i32
    %c0_i32_0 = arith.constant 0 : i32
    %c0_i32_1 = arith.constant 0 : i32
    return %c0_i32, %c0_i32_0 : i32, i32
  }
  func.func @transform_2(%arg0: i32) -> (i32, i32) {
    %c0_i32 = arith.constant 0 : i32
    %c0_i32_0 = arith.constant 0 : i32
    %c0_i32_1 = arith.constant 0 : i32
    return %c0_i32, %c0_i32_0 : i32, i32
  }
  func.func @transform_3(%arg0: i32) -> (i32, i32) {
    %c0_i32 = arith.constant 0 : i32
    %c0_i32_0 = arith.constant 0 : i32
    %c0_i32_1 = arith.constant 0 : i32
    return %c0_i32, %c0_i32_0 : i32, i32
  }
  func.func @transform_4(%arg0: i32) -> (i32, i32) {
    %c0_i32 = arith.constant 0 : i32
    %c0_i32_0 = arith.constant 0 : i32
    %c0_i32_1 = arith.constant 0 : i32
    return %c0_i32, %c0_i32_0 : i32, i32
  }
  func.func @transform_5(%arg0: i32) -> (i32, i32) {
    %c0_i32 = arith.constant 0 : i32
    %c0_i32_0 = arith.constant 0 : i32
    return %arg0, %c0_i32 : i32, i32
  }
}

</mosaic_0001>

<bundles_post_ra>
// kernel: _ffn_impl.1
= control target key start
LH: loop header
LB: loop body
LE: loop exit
PB: predicated region body
PF: predicated region fallthrough
CT: control target
= control target key end

     0   :  { %s260_s0 = inlined_call_operand.vmem [shape: f32[16,32], index: 0, kind: input, shape index: {}]   ;;  %s261_s1 = inlined_call_operand.vmem [shape: f32[32,64], index: 1, kind: input, shape index: {}]   ;;  %s262_s2 = inlined_call_operand.vmem [shape: f32[1,64], index: 2, kind: input, shape index: {}]   ;;  %s263_s3 = inlined_call_operand.vmem [shape: f32[64,32], index: 3, kind: input, shape index: {}]   ;;  %s264_s4 = inlined_call_operand.vmem [shape: f32[1,32], index: 4, kind: input, shape index: {}]   ;;  %s265_s5 = inlined_call_operand.hbm [shape: f32[16,32], index: 5, kind: output, shape index: {}]  }
   0x1   :  { %v26_v0 = vld [vmem:[%s261_s1 + $0x18] sm:$0xff]  ;;  %v25_v1 = vld [vmem:[%s261_s1 + $0x10] sm:$0xff]  ;;  %v24_v2 = vld [vmem:[%s261_s1 + $0x8] sm:$0xff] }
   0x2   :  { %129 = vmatpush.msra.mxu3 %v26_v0  ;;  %50 = vmatpush.msra.mxu0 %v26_v0  ;;  %v70_v3 = vld [vmem:[%s263_s3 + $0x38] sm:$0xff]  ;;  %v69_v4 = vld [vmem:[%s263_s3 + $0x30] sm:$0xff]  ;;  %v23_v5 = vld [vmem:[%s261_s1] sm:$0xff] }
   0x3   :  { %133 = vmatpush.msra.mxu2 %v70_v3  ;;  %90 = vmatpush.msra.mxu1 %v70_v3 }
   0x4   :  { %130 = vmatpush.msra.mxu3 %v25_v1  ;;  %51 = vmatpush.msra.mxu0 %v25_v1 }
   0x5   :  { %10 = vsyncpa [#allocation3], 0  ;;  %v22_v6 = vld [vmem:[%s260_s0 + $0x8] sm:$0xff]  ;;  %vm31_vm0 = vcmask 261120   ;;  %v21_v7 = vld [vmem:[%s260_s0] sm:$0xff]  ;;  %134 = vmatpush.msra.mxu2 %v69_v4  ;;  %91 = vmatpush.msra.mxu1 %v69_v4  ;;  %vm75_vm1 = vcmask 523264  }
   0x6   :  { %131 = vmatpush.msra.mxu3 %v24_v2  ;;  %52 = vmatpush.msra.mxu0 %v24_v2  ;;  %v68_v8 = vld [vmem:[%s263_s3 + $0x28] sm:$0xff]  ;;  %v67_v9 = vld [vmem:[%s263_s3 + $0x20] sm:$0xff]  ;;  %v66_v10 = vld [vmem:[%s263_s3 + $0x18] sm:$0xff]  ;;  %s113_s25 = sshll.u32 %s265_s5, 4  ;;  %s173_s26 = smov 128   ;;  %s114_s25 = int_to_ptr.hbm [resolvable:$true] %s113_s25 }
   0x7   :  { %135 = vmatpush.msra.mxu2 %v68_v8  ;;  %92 = vmatpush.msra.mxu1 %v68_v8  ;;  %v65_v11 = vld [vmem:[%s263_s3 + $0x10] sm:$0xff]  ;;  %v64_v12 = vld [vmem:[%s263_s3 + $0x8] sm:$0xff]  ;;  %v63_v13 = vld [vmem:[%s263_s3] sm:$0xff]  ;;  %s172_s3 = smov [#allocation2]   ;;  %s174_s27 = smov 8  }
   0x8   :  { %132 = vmatpush.msra.mxu3 %v23_v5  ;;  %53 = vmatpush.msra.mxu0 %v23_v5  ;;  %v144_v14 = vld [vmem:[%s262_s2] ss:$0 sm:$0xff]  ;;  %s111_s23 = sshll.u32 %s172_s3, 4  ;;  %s112_s23 = int_to_ptr.vmem [resolvable:$true] %s111_s23 }
   0x9   :  { %126 = vmatmul.msk.f32.vlgmr.msra.gmra.mxu3 %vm31_vm0, %v22_v6  ;;  %125 = vmatmul.msk.f32.vlgmr.msra.gmra.mxu0 %vm31_vm0, %v21_v7  ;;  %v145_v21 = vld [vmem:[%s264_s4] ss:$0 sm:$0xff] }
   0xa   :  { %136 = vmatpush.msra.mxu2 %v67_v9  ;;  %93 = vmatpush.msra.mxu1 %v67_v9 }
   0xc   :  { %137 = vmatpush.msra.mxu2 %v66_v10  ;;  %94 = vmatpush.msra.mxu1 %v66_v10 }
   0xe   :  { %138 = vmatpush.msra.mxu2 %v65_v11  ;;  %95 = vmatpush.msra.mxu1 %v65_v11 }
  0x10   :  { %139 = vmatpush.msra.mxu2 %v64_v12  ;;  %96 = vmatpush.msra.mxu1 %v64_v12 }
  0x12   :  { %140 = vmatpush.msra.mxu2 %v63_v13  ;;  %97 = vmatpush.msra.mxu1 %v63_v13 }
  0x86   :  { %v55_v15 = vpop.f32.mrf.mxu0 }
  0x87   :  { %v56_v16 = vadd.f32 %v144_v14, %v55_v15 }
  0x89   :  { %v61_v17 = vmax.f32 %v56_v16, 0.0 }
  0x8b   :  { %127 = vmatmul.msk.f32.vlgmr.msra.gmra.mxu1 %vm75_vm1, %v61_v17 }
  0x8c   :  { %v58_v18 = vpop.f32.mrf.mxu3 }
  0x8d   :  { %v59_v19 = vadd.f32 %v144_v14, %v58_v18 }
  0x8f   :  { %v62_v20 = vmax.f32 %v59_v19, 0.0 }
  0x91   :  { %128 = vmatmul.msk.f32.vlgmr.msra.gmra.mxu2 %vm75_vm1, %v62_v20 }
 0x108   :  { %v99_v22 = vpop.f32.mrf.mxu1 }
 0x109   :  { %v100_v23 = vadd.f32 %v145_v21, %v99_v22 }
 0x10b   :  { %105 = vst.msk [vmem:[#allocation2] sm:$0xff] %vm31_vm0, %v100_v23 }
 0x114   :  { %v102_v24 = vpop.f32.mrf.mxu2 }
 0x115   :  { %v103_v25 = vadd.f32 %v145_v21, %v102_v24 }
 0x117   :  { %106 = vst.msk [vmem:[#allocation2 + $0x8] sm:$0xff] %vm31_vm0, %v103_v25 }
 0x118   :  { %119 = dma.vmem_to_hbm [thread:$0]  %s112_s23, 256, %s114_s25, [#allocation3], %s173_s26, %s173_s26, %s174_s27  }
 0x119   :  { %170 = dma.done.wait [#allocation3], 256  }
 0x11a   :  { %171 = vsyncadd [#allocation3], 4294967040 }
 0x11b   :  { %124 = vsyncpa [#allocation3], 1 }

</bundles_post_ra>
